<compile_context>
chip_gen: v7x
topology: tpu7x:2x2x1
jax: 0.10.0
libtpu: 0.0.40
codegen_flags: <defaults>
</compile_context>

<pallas_src>
import functools
import math

import jax
import jax.numpy as jnp
from jax import lax
from jax.experimental import pallas as pl
from jax.experimental.pallas import tpu as pltpu

EPS = 1e-6        # vector-neuron epsilon
LN_EPS = 1e-5     # nn.LayerNorm default eps
BN_EPS = 1e-5     # nn.BatchNorm2d default eps
BN_SCALE = 1.0 / math.sqrt(1.0 + BN_EPS)  # eval-mode VNBatchNorm == constant scale
NEG_SLOPE_1 = 0.2                         # conv_1 negative slope (conv_f uses 0.0)

_LANE = 128
_TL_TARGET = 512  # lane extent per tile (>=512 keeps HBM-roofline efficiency)


def _round_up(a, b):
    return ((a + b - 1) // b) * b


def _vn_sensor_attn_kernel(x_ref, gamma_ref, beta_ref,
                           w1f_ref, w1d_ref, w2f_ref, w2d_ref,
                           out_ref, attn_ref=None, *, nb_units, approx_recip):
    """One (batch, L-tile) block.  x_ref block: (1, 3, C, TL); C=sublanes, L=lanes."""
    v = x_ref[0].astype(jnp.float32)            # (3, C, TL)
    gamma = gamma_ref[...].astype(jnp.float32)  # (C, 1)
    beta = beta_ref[...].astype(jnp.float32)    # (C, 1)

    # ---- nn.LayerNorm over the channel axis C (sublane axis) ----
    mu = jnp.mean(v, axis=1, keepdims=True)                       # (3, 1, TL)
    var = jnp.mean((v - mu) * (v - mu), axis=1, keepdims=True)
    ln = (v - mu) * lax.rsqrt(var + LN_EPS) * gamma[None] + beta[None]   # (3, C, TL)

    # ---- squared norm over the 3-vector axis (leading dim, explicit 3-term add) ----
    s = ln[0] * ln[0] + ln[1] * ln[1] + ln[2] * ln[2]             # (C, TL)

    # ---- conv_1 (1 -> U, slope 0.2) fused with conv_f's linear maps.
    #      Each unit only contributes a scalar gain field g_u (see header). ----
    zeros = jnp.zeros_like(s)

    def unit_body(u, carry):
        gp, gd = carry
        a_u = w1f_ref[u]                 # feat weight, BN_SCALE pre-folded (wrapper)
        b_u = w1d_ref[u]                 # dir weight
        dot = (a_u * b_u) * s
        dnsq = (b_u * b_u) * s
        c = jnp.where(dot >= 0.0, 0.0,
                      dot * pl.reciprocal(dnsq + EPS, approx=approx_recip))
        g_u = a_u - ((1.0 - NEG_SLOPE_1) * b_u) * c
        return gp + w2f_ref[u] * g_u, gd + w2d_ref[u] * g_u

    gp, gd = lax.fori_loop(0, nb_units, unit_body, (zeros, zeros), unroll=True)

    # ---- conv_f VN leaky-ReLU (negative_slope = 0.0) ----
    dot2 = (gp * gd) * s
    dnsq2 = (gd * gd) * s
    c2 = jnp.where(dot2 >= 0.0, 0.0,
                   dot2 * pl.reciprocal(dnsq2 + EPS, approx=approx_recip))
    amp = gp - c2 * gd                                            # (C, TL)
    a = amp[None] * ln                                            # (3, C, TL)

    # ---- Softmax over channels C (torch Softmax(dim=1) on [B,C,L,3,1]) ----
    m = jnp.max(a, axis=1, keepdims=True)
    e = jnp.exp(a - m)
    attn = e * pl.reciprocal(jnp.sum(e, axis=1, keepdims=True), approx=approx_recip)

    out_ref[0] = (ln * attn).astype(out_ref.dtype)
    if attn_ref is not None:
        attn_ref[0] = attn.astype(attn_ref.dtype)


def vn_sensor_attention(x, gamma, beta, w1f, w1d, w2f, w2d, *,
                        return_attn=True, approx_recip=True, tl_target=_TL_TARGET):
    """x: [B, L, 3, C].  Returns (ln(x) * attn, attn) (or just the product)."""
    assert x.ndim == 4 and x.shape[2] == 3
    B, L, _, C = x.shape
    U = int(w1f.shape[0])
    dtype = x.dtype

    # Fold the eval-mode VNBatchNorm scale into the (U,) feature weights (free).
    w1f_s = (w1f * BN_SCALE).astype(jnp.float32)
    w2f_s = (w2f * BN_SCALE).astype(jnp.float32)
    w1d_f = w1d.astype(jnp.float32)
    w2d_f = w2d.astype(jnp.float32)

    # Lane-dense layout: [B, 3, C, L_pad], L padded to a multiple of the tile.
    tl = min(tl_target, _round_up(L, _LANE))
    l_pad = _round_up(L, tl)
    xt = jnp.transpose(x, (0, 2, 3, 1))                 # (B, 3, C, L)
    if l_pad != L:
        xt = jnp.pad(xt, ((0, 0), (0, 0), (0, 0), (0, l_pad - L)))
    gamma2 = gamma.reshape(C, 1).astype(dtype)
    beta2 = beta.reshape(C, 1).astype(dtype)

    n_out = 2 if return_attn else 1
    grid = (B, l_pad // tl)

    big_spec = pl.BlockSpec((1, 3, C, tl), lambda b, l: (b, 0, 0, l))
    vec_spec = pl.BlockSpec((C, 1), lambda b, l: (0, 0))
    smem_spec = pl.BlockSpec(memory_space=pltpu.MemorySpace.SMEM)

    out_shape = tuple(jax.ShapeDtypeStruct((B, 3, C, l_pad), dtype) for _ in range(n_out))
    out_specs = [pl.BlockSpec((1, 3, C, tl), lambda b, l: (b, 0, 0, l)) for _ in range(n_out)]

    # VMEM budget: (x tile + n_out output tiles) double-buffered + gamma/beta.
    # For typical C this is a few hundred KiB, far below every generation's
    # scoped default (v5e 16 MiB, v6e/v7x 32 MiB); set the limit explicitly.
    block_bytes = 3 * C * tl * jnp.dtype(dtype).itemsize
    need = 2 * (1 + n_out) * block_bytes + 2 * 2 * C * jnp.dtype(dtype).itemsize
    vmem_limit = 32 * 1024 * 1024
    assert need < vmem_limit // 2, "L tile too large for the scoped VMEM budget"

    kernel = functools.partial(_vn_sensor_attn_kernel,
                               nb_units=U, approx_recip=approx_recip)

    res = pl.pallas_call(
        kernel,
        out_shape=out_shape,
        grid_spec=pltpu.PrefetchScalarGridSpec(
            num_scalar_prefetch=0,
            grid=grid,
            in_specs=[
                big_spec,     # x, [B, 3, C, L_pad]
                vec_spec,     # LN gamma, (C, 1)
                vec_spec,     # LN beta,  (C, 1)
                smem_spec,    # w1 feat * BN_SCALE, (U,)
                smem_spec,    # w1 dir,  (U,)
                smem_spec,    # wf feat * BN_SCALE, (U,)
                smem_spec,    # wf dir,  (U,)
            ],
            out_specs=out_specs,
        ),
        compiler_params=pltpu.CompilerParams(
            dimension_semantics=("parallel", "parallel"),
            vmem_limit_bytes=vmem_limit,
        ),
    )(xt, gamma2, beta2, w1f_s, w1d_f, w2f_s, w2d_f)

    def back(y):  # (B, 3, C, L_pad) -> (B, L, 3, C)
        return jnp.transpose(y[..., :L], (0, 3, 1, 2))

    if return_attn:
        return back(res[0]), back(res[1])
    return back(res[0])


def reference(x, gamma, beta, w1f, w1d, w2f, w2d):
    """Pure-JAX reference mirroring the PyTorch forward semantics (direct form)."""
    mu = jnp.mean(x, axis=-1, keepdims=True)
    var = jnp.mean((x - mu) ** 2, axis=-1, keepdims=True)
    ln = (x - mu) * lax.rsqrt(var + LN_EPS) * gamma + beta          # (B,L,3,C)

    def leaky(p, d, ns):
        dot = jnp.sum(p * d, axis=2, keepdims=True)                 # over the 3-axis
        dnsq = jnp.sum(d * d, axis=2, keepdims=True)
        mask = (dot >= 0.0).astype(p.dtype)
        proj = p - (dot / (dnsq + EPS)) * d
        return ns * p + (1.0 - ns) * (mask * p + (1.0 - mask) * proj)

    # conv_1 (1 -> U), channels appended as trailing axis
    p1 = ln[..., None] * (w1f * BN_SCALE)                           # (B,L,3,C,U)
    d1 = ln[..., None] * w1d
    h = leaky(p1, d1, NEG_SLOPE_1)
    # conv_f (U -> 1)
    p2 = jnp.sum(h * w2f, axis=-1) * BN_SCALE                       # (B,L,3,C)
    d2 = jnp.sum(h * w2d, axis=-1)
    a = leaky(p2, d2, 0.0)
    # softmax over C
    m = jnp.max(a, axis=-1, keepdims=True)
    e = jnp.exp(a - m)
    attn = e / jnp.sum(e, axis=-1, keepdims=True)
    return ln * attn, attn


if __name__ == "__main__":
    key = jax.random.PRNGKey(0)
    kx, kg, kb, k1, k2, k3, k4 = jax.random.split(key, 7)

    B, L, C, U = 2, 8, 16, 4          # input [B, L, 3, C], nb_units = U
    x = jax.random.normal(kx, (B, L, 3, C), dtype=jnp.float32)
    gamma = 1.0 + 0.1 * jax.random.normal(kg, (C,), dtype=jnp.float32)   # LayerNorm weight
    beta = 0.1 * jax.random.normal(kb, (C,), dtype=jnp.float32)          # LayerNorm bias
    w1f = jax.random.normal(k1, (U,), dtype=jnp.float32)                 # Linear(1,U) feat weight
    w1d = jax.random.normal(k2, (U,), dtype=jnp.float32)                 # Linear(1,U) dir weight
    w2f = jax.random.normal(k3, (U,), dtype=jnp.float32) / math.sqrt(U)  # Linear(U,1) feat weight
    w2d = jax.random.normal(k4, (U,), dtype=jnp.float32) / math.sqrt(U)  # Linear(U,1) dir weight

    ref_out, ref_attn = reference(x, gamma, beta, w1f, w1d, w2f, w2d)

    # Exact-reciprocal variant: validates layout + algebraic factorization tightly.
    out_x, attn_x = vn_sensor_attention(x, gamma, beta, w1f, w1d, w2f, w2d,
                                        approx_recip=False)
    jax.block_until_ready((out_x, attn_x))
    assert out_x.shape == (B, L, 3, C) and attn_x.shape == (B, L, 3, C)
    assert jnp.allclose(out_x, ref_out, atol=1e-5, rtol=1e-5)
    assert jnp.allclose(attn_x, ref_attn, atol=1e-5, rtol=1e-5)

    # Default fast path: EUP approximate reciprocals (perf-review item); the small
    # vrcp drift is bounded here with a looser sanity tolerance, exactness being
    # established by the approx_recip=False run above.
    out, attn = vn_sensor_attention(x, gamma, beta, w1f, w1d, w2f, w2d)
    jax.block_until_ready((out, attn))
    assert out.shape == (B, L, 3, C) and attn.shape == (B, L, 3, C)
    assert jnp.allclose(out, ref_out, atol=1e-2, rtol=1e-2)
    assert jnp.allclose(attn, ref_attn, atol=1e-2, rtol=1e-2)

    print("KERNEL_OK")
</pallas_src>

<mosaic_0001>
module attributes {stable_mosaic.version = 11 : i64} {
  func.func @_vn_sensor_attn_kernel(%arg0: i32, %arg1: i32, %arg2: memref<1x3x16x128xf32, #tpu.memory_space<vmem>>, %arg3: memref<16x1xf32, #tpu.memory_space<vmem>>, %arg4: memref<16x1xf32, #tpu.memory_space<vmem>>, %arg5: memref<4xf32, #tpu.memory_space<smem>>, %arg6: memref<4xf32, #tpu.memory_space<smem>>, %arg7: memref<4xf32, #tpu.memory_space<smem>>, %arg8: memref<4xf32, #tpu.memory_space<smem>>, %arg9: memref<1x3x16x128xf32, #tpu.memory_space<vmem>>, %arg10: memref<1x3x16x128xf32, #tpu.memory_space<vmem>>) attributes {dimension_semantics = [#tpu.dimension_semantics<parallel>, #tpu.dimension_semantics<parallel>], iteration_bounds = array<i64: 2, 1>, scalar_prefetch = 0 : i64, scratch_operands = 0 : i64, tpu.core_type = #tpu.core_type<tc>, window_params = [{transform_indices = @transform_0, window_bounds = array<i64: 1, 3, 16, 128>}, {pipeline_mode = #tpu.pipeline_mode<synchronous>, transform_indices = @transform_1, window_bounds = array<i64: 16, 1>}, {pipeline_mode = #tpu.pipeline_mode<synchronous>, transform_indices = @transform_2, window_bounds = array<i64: 16, 1>}, {transform_indices = @transform_3, window_bounds = array<i64: 4>}, {transform_indices = @transform_4, window_bounds = array<i64: 4>}, {transform_indices = @transform_5, window_bounds = array<i64: 4>}, {transform_indices = @transform_6, window_bounds = array<i64: 4>}, {transform_indices = @transform_7, window_bounds = array<i64: 1, 3, 16, 128>}, {transform_indices = @transform_8, window_bounds = array<i64: 1, 3, 16, 128>}]} {
    %c0 = arith.constant 0 : index
    %c0_0 = arith.constant 0 : index
    %c0_1 = arith.constant 0 : index
    %c0_2 = arith.constant 0 : index
    %0 = vector.load %arg2[%c0, %c0_0, %c0_1, %c0_2] : memref<1x3x16x128xf32, #tpu.memory_space<vmem>>, vector<1x3x16x128xf32>
    %1 = vector.shape_cast %0 : vector<1x3x16x128xf32> to vector<3x16x128xf32>
    %c0_3 = arith.constant 0 : index
    %c0_4 = arith.constant 0 : index
    %2 = vector.load %arg3[%c0_3, %c0_4] : memref<16x1xf32, #tpu.memory_space<vmem>>, vector<16x1xf32>
    %c0_5 = arith.constant 0 : index
    %c0_6 = arith.constant 0 : index
    %3 = vector.load %arg4[%c0_5, %c0_6] : memref<16x1xf32, #tpu.memory_space<vmem>>, vector<16x1xf32>
    %cst = arith.constant dense<0.000000e+00> : vector<3x128xf32>
    %4 = vector.multi_reduction <add>, %1, %cst [1] : vector<3x16x128xf32> to vector<3x128xf32>
    %5 = vector.shape_cast %4 : vector<3x128xf32> to vector<3x1x128xf32>
    %cst_7 = arith.constant 1.600000e+01 : f32
    %6 = vector.broadcast %cst_7 : f32 to vector<3x1x128xf32>
    %7 = arith.divf %5, %6 : vector<3x1x128xf32>
    %8 = vector.broadcast %7 : vector<3x1x128xf32> to vector<3x16x128xf32>
    %9 = arith.subf %1, %8 : vector<3x16x128xf32>
    %10 = vector.broadcast %7 : vector<3x1x128xf32> to vector<3x16x128xf32>
    %11 = arith.subf %1, %10 : vector<3x16x128xf32>
    %12 = arith.mulf %9, %11 : vector<3x16x128xf32>
    %cst_8 = arith.constant dense<0.000000e+00> : vector<3x128xf32>
    %13 = vector.multi_reduction <add>, %12, %cst_8 [1] : vector<3x16x128xf32> to vector<3x128xf32>
    %14 = vector.shape_cast %13 : vector<3x128xf32> to vector<3x1x128xf32>
    %cst_9 = arith.constant 1.600000e+01 : f32
    %15 = vector.broadcast %cst_9 : f32 to vector<3x1x128xf32>
    %16 = arith.divf %14, %15 : vector<3x1x128xf32>
    %17 = vector.broadcast %7 : vector<3x1x128xf32> to vector<3x16x128xf32>
    %18 = arith.subf %1, %17 : vector<3x16x128xf32>
    %cst_10 = arith.constant 9.99999974E-6 : f32
    %19 = vector.broadcast %cst_10 : f32 to vector<3x1x128xf32>
    %20 = arith.addf %16, %19 : vector<3x1x128xf32>
    %21 = math.rsqrt %20 : vector<3x1x128xf32>
    %22 = vector.broadcast %21 : vector<3x1x128xf32> to vector<3x16x128xf32>
    %23 = arith.mulf %18, %22 : vector<3x16x128xf32>
    %24 = vector.shape_cast %2 : vector<16x1xf32> to vector<1x16x1xf32>
    %25 = vector.broadcast %24 : vector<1x16x1xf32> to vector<3x16x128xf32>
    %26 = arith.mulf %23, %25 : vector<3x16x128xf32>
    %27 = vector.shape_cast %3 : vector<16x1xf32> to vector<1x16x1xf32>
    %28 = vector.broadcast %27 : vector<1x16x1xf32> to vector<3x16x128xf32>
    %29 = arith.addf %26, %28 : vector<3x16x128xf32>
    %30 = vector.extract_strided_slice %29 {offsets = [0, 0, 0], sizes = [1, 16, 128], strides = [1, 1, 1]} : vector<3x16x128xf32> to vector<1x16x128xf32>
    %31 = vector.shape_cast %30 : vector<1x16x128xf32> to vector<16x128xf32>
    %32 = vector.extract_strided_slice %29 {offsets = [0, 0, 0], sizes = [1, 16, 128], strides = [1, 1, 1]} : vector<3x16x128xf32> to vector<1x16x128xf32>
    %33 = vector.shape_cast %32 : vector<1x16x128xf32> to vector<16x128xf32>
    %34 = arith.mulf %31, %33 : vector<16x128xf32>
    %35 = vector.extract_strided_slice %29 {offsets = [1, 0, 0], sizes = [1, 16, 128], strides = [1, 1, 1]} : vector<3x16x128xf32> to vector<1x16x128xf32>
    %36 = vector.shape_cast %35 : vector<1x16x128xf32> to vector<16x128xf32>
    %37 = vector.extract_strided_slice %29 {offsets = [1, 0, 0], sizes = [1, 16, 128], strides = [1, 1, 1]} : vector<3x16x128xf32> to vector<1x16x128xf32>
    %38 = vector.shape_cast %37 : vector<1x16x128xf32> to vector<16x128xf32>
    %39 = arith.mulf %36, %38 : vector<16x128xf32>
    %40 = arith.addf %34, %39 : vector<16x128xf32>
    %41 = vector.extract_strided_slice %29 {offsets = [2, 0, 0], sizes = [1, 16, 128], strides = [1, 1, 1]} : vector<3x16x128xf32> to vector<1x16x128xf32>
    %42 = vector.shape_cast %41 : vector<1x16x128xf32> to vector<16x128xf32>
    %43 = vector.extract_strided_slice %29 {offsets = [2, 0, 0], sizes = [1, 16, 128], strides = [1, 1, 1]} : vector<3x16x128xf32> to vector<1x16x128xf32>
    %44 = vector.shape_cast %43 : vector<1x16x128xf32> to vector<16x128xf32>
    %45 = arith.mulf %42, %44 : vector<16x128xf32>
    %46 = arith.addf %40, %45 : vector<16x128xf32>
    %cst_11 = arith.constant 0.000000e+00 : f32
    %47 = vector.broadcast %cst_11 : f32 to vector<16x128xf32>
    %c0_i32 = arith.constant 0 : i32
    %48 = arith.index_cast %c0_i32 : i32 to index
    %49 = memref.load %arg5[%48] : memref<4xf32, #tpu.memory_space<smem>>
    %50 = arith.index_cast %c0_i32 : i32 to index
    %51 = memref.load %arg6[%50] : memref<4xf32, #tpu.memory_space<smem>>
    %52 = arith.mulf %49, %51 : f32
    %53 = vector.broadcast %52 : f32 to vector<16x128xf32>
    %54 = arith.mulf %53, %46 : vector<16x128xf32>
    %55 = arith.mulf %51, %51 : f32
    %56 = vector.broadcast %55 : f32 to vector<16x128xf32>
    %57 = arith.mulf %56, %46 : vector<16x128xf32>
    %cst_12 = arith.constant 0.000000e+00 : f32
    %58 = vector.broadcast %cst_12 : f32 to vector<16x128xf32>
    %59 = arith.cmpf oge, %54, %58 : vector<16x128xf32>
    %cst_13 = arith.constant 9.99999997E-7 : f32
    %60 = vector.broadcast %cst_13 : f32 to vector<16x128xf32>
    %61 = arith.addf %57, %60 : vector<16x128xf32>
    %62 = tpu.reciprocal %61 : vector<16x128xf32> -> vector<16x128xf32>
    %63 = arith.mulf %54, %62 : vector<16x128xf32>
    %cst_14 = arith.constant 0.000000e+00 : f32
    %64 = vector.broadcast %cst_14 : f32 to vector<16x128xf32>
    %65 = arith.select %59, %64, %63 : vector<16x128xi1>, vector<16x128xf32>
    %cst_15 = arith.constant 8.000000e-01 : f32
    %66 = arith.mulf %cst_15, %51 : f32
    %67 = vector.broadcast %66 : f32 to vector<16x128xf32>
    %68 = arith.mulf %67, %65 : vector<16x128xf32>
    %69 = vector.broadcast %49 : f32 to vector<16x128xf32>
    %70 = arith.subf %69, %68 : vector<16x128xf32>
    %71 = arith.index_cast %c0_i32 : i32 to index
    %72 = memref.load %arg7[%71] : memref<4xf32, #tpu.memory_space<smem>>
    %73 = vector.broadcast %72 : f32 to vector<16x128xf32>
    %74 = arith.mulf %73, %70 : vector<16x128xf32>
    %75 = arith.addf %47, %74 : vector<16x128xf32>
    %76 = arith.index_cast %c0_i32 : i32 to index
    %77 = memref.load %arg8[%76] : memref<4xf32, #tpu.memory_space<smem>>
    %78 = vector.broadcast %77 : f32 to vector<16x128xf32>
    %79 = arith.mulf %78, %70 : vector<16x128xf32>
    %80 = arith.addf %47, %79 : vector<16x128xf32>
    %c1_i32 = arith.constant 1 : i32
    %81 = arith.index_cast %c1_i32 : i32 to index
    %82 = memref.load %arg5[%81] : memref<4xf32, #tpu.memory_space<smem>>
    %83 = arith.index_cast %c1_i32 : i32 to index
    %84 = memref.load %arg6[%83] : memref<4xf32, #tpu.memory_space<smem>>
    %85 = arith.mulf %82, %84 : f32
    %86 = vector.broadcast %85 : f32 to vector<16x128xf32>
    %87 = arith.mulf %86, %46 : vector<16x128xf32>
    %88 = arith.mulf %84, %84 : f32
    %89 = vector.broadcast %88 : f32 to vector<16x128xf32>
    %90 = arith.mulf %89, %46 : vector<16x128xf32>
    %cst_16 = arith.constant 0.000000e+00 : f32
    %91 = vector.broadcast %cst_16 : f32 to vector<16x128xf32>
    %92 = arith.cmpf oge, %87, %91 : vector<16x128xf32>
    %cst_17 = arith.constant 9.99999997E-7 : f32
    %93 = vector.broadcast %cst_17 : f32 to vector<16x128xf32>
    %94 = arith.addf %90, %93 : vector<16x128xf32>
    %95 = tpu.reciprocal %94 : vector<16x128xf32> -> vector<16x128xf32>
    %96 = arith.mulf %87, %95 : vector<16x128xf32>
    %cst_18 = arith.constant 0.000000e+00 : f32
    %97 = vector.broadcast %cst_18 : f32 to vector<16x128xf32>
    %98 = arith.select %92, %97, %96 : vector<16x128xi1>, vector<16x128xf32>
    %cst_19 = arith.constant 8.000000e-01 : f32
    %99 = arith.mulf %cst_19, %84 : f32
    %100 = vector.broadcast %99 : f32 to vector<16x128xf32>
    %101 = arith.mulf %100, %98 : vector<16x128xf32>
    %102 = vector.broadcast %82 : f32 to vector<16x128xf32>
    %103 = arith.subf %102, %101 : vector<16x128xf32>
    %104 = arith.index_cast %c1_i32 : i32 to index
    %105 = memref.load %arg7[%104] : memref<4xf32, #tpu.memory_space<smem>>
    %106 = vector.broadcast %105 : f32 to vector<16x128xf32>
    %107 = arith.mulf %106, %103 : vector<16x128xf32>
    %108 = arith.addf %75, %107 : vector<16x128xf32>
    %109 = arith.index_cast %c1_i32 : i32 to index
    %110 = memref.load %arg8[%109] : memref<4xf32, #tpu.memory_space<smem>>
    %111 = vector.broadcast %110 : f32 to vector<16x128xf32>
    %112 = arith.mulf %111, %103 : vector<16x128xf32>
    %113 = arith.addf %80, %112 : vector<16x128xf32>
    %c2_i32 = arith.constant 2 : i32
    %114 = arith.index_cast %c2_i32 : i32 to index
    %115 = memref.load %arg5[%114] : memref<4xf32, #tpu.memory_space<smem>>
    %116 = arith.index_cast %c2_i32 : i32 to index
    %117 = memref.load %arg6[%116] : memref<4xf32, #tpu.memory_space<smem>>
    %118 = arith.mulf %115, %117 : f32
    %119 = vector.broadcast %118 : f32 to vector<16x128xf32>
    %120 = arith.mulf %119, %46 : vector<16x128xf32>
    %121 = arith.mulf %117, %117 : f32
    %122 = vector.broadcast %121 : f32 to vector<16x128xf32>
    %123 = arith.mulf %122, %46 : vector<16x128xf32>
    %cst_20 = arith.constant 0.000000e+00 : f32
    %124 = vector.broadcast %cst_20 : f32 to vector<16x128xf32>
    %125 = arith.cmpf oge, %120, %124 : vector<16x128xf32>
    %cst_21 = arith.constant 9.99999997E-7 : f32
    %126 = vector.broadcast %cst_21 : f32 to vector<16x128xf32>
    %127 = arith.addf %123, %126 : vector<16x128xf32>
    %128 = tpu.reciprocal %127 : vector<16x128xf32> -> vector<16x128xf32>
    %129 = arith.mulf %120, %128 : vector<16x128xf32>
    %cst_22 = arith.constant 0.000000e+00 : f32
    %130 = vector.broadcast %cst_22 : f32 to vector<16x128xf32>
    %131 = arith.select %125, %130, %129 : vector<16x128xi1>, vector<16x128xf32>
    %cst_23 = arith.constant 8.000000e-01 : f32
    %132 = arith.mulf %cst_23, %117 : f32
    %133 = vector.broadcast %132 : f32 to vector<16x128xf32>
    %134 = arith.mulf %133, %131 : vector<16x128xf32>
    %135 = vector.broadcast %115 : f32 to vector<16x128xf32>
    %136 = arith.subf %135, %134 : vector<16x128xf32>
    %137 = arith.index_cast %c2_i32 : i32 to index
    %138 = memref.load %arg7[%137] : memref<4xf32, #tpu.memory_space<smem>>
    %139 = vector.broadcast %138 : f32 to vector<16x128xf32>
    %140 = arith.mulf %139, %136 : vector<16x128xf32>
    %141 = arith.addf %108, %140 : vector<16x128xf32>
    %142 = arith.index_cast %c2_i32 : i32 to index
    %143 = memref.load %arg8[%142] : memref<4xf32, #tpu.memory_space<smem>>
    %144 = vector.broadcast %143 : f32 to vector<16x128xf32>
    %145 = arith.mulf %144, %136 : vector<16x128xf32>
    %146 = arith.addf %113, %145 : vector<16x128xf32>
    %c3_i32 = arith.constant 3 : i32
    %147 = arith.index_cast %c3_i32 : i32 to index
    %148 = memref.load %arg5[%147] : memref<4xf32, #tpu.memory_space<smem>>
    %149 = arith.index_cast %c3_i32 : i32 to index
    %150 = memref.load %arg6[%149] : memref<4xf32, #tpu.memory_space<smem>>
    %151 = arith.mulf %148, %150 : f32
    %152 = vector.broadcast %151 : f32 to vector<16x128xf32>
    %153 = arith.mulf %152, %46 : vector<16x128xf32>
    %154 = arith.mulf %150, %150 : f32
    %155 = vector.broadcast %154 : f32 to vector<16x128xf32>
    %156 = arith.mulf %155, %46 : vector<16x128xf32>
    %cst_24 = arith.constant 0.000000e+00 : f32
    %157 = vector.broadcast %cst_24 : f32 to vector<16x128xf32>
    %158 = arith.cmpf oge, %153, %157 : vector<16x128xf32>
    %cst_25 = arith.constant 9.99999997E-7 : f32
    %159 = vector.broadcast %cst_25 : f32 to vector<16x128xf32>
    %160 = arith.addf %156, %159 : vector<16x128xf32>
    %161 = tpu.reciprocal %160 : vector<16x128xf32> -> vector<16x128xf32>
    %162 = arith.mulf %153, %161 : vector<16x128xf32>
    %cst_26 = arith.constant 0.000000e+00 : f32
    %163 = vector.broadcast %cst_26 : f32 to vector<16x128xf32>
    %164 = arith.select %158, %163, %162 : vector<16x128xi1>, vector<16x128xf32>
    %cst_27 = arith.constant 8.000000e-01 : f32
    %165 = arith.mulf %cst_27, %150 : f32
    %166 = vector.broadcast %165 : f32 to vector<16x128xf32>
    %167 = arith.mulf %166, %164 : vector<16x128xf32>
    %168 = vector.broadcast %148 : f32 to vector<16x128xf32>
    %169 = arith.subf %168, %167 : vector<16x128xf32>
    %170 = arith.index_cast %c3_i32 : i32 to index
    %171 = memref.load %arg7[%170] : memref<4xf32, #tpu.memory_space<smem>>
    %172 = vector.broadcast %171 : f32 to vector<16x128xf32>
    %173 = arith.mulf %172, %169 : vector<16x128xf32>
    %174 = arith.addf %141, %173 : vector<16x128xf32>
    %175 = arith.index_cast %c3_i32 : i32 to index
    %176 = memref.load %arg8[%175] : memref<4xf32, #tpu.memory_space<smem>>
    %177 = vector.broadcast %176 : f32 to vector<16x128xf32>
    %178 = arith.mulf %177, %169 : vector<16x128xf32>
    %179 = arith.addf %146, %178 : vector<16x128xf32>
    %c4_i32 = arith.constant 4 : i32
    %180 = arith.mulf %174, %179 : vector<16x128xf32>
    %181 = arith.mulf %180, %46 : vector<16x128xf32>
    %182 = arith.mulf %179, %179 : vector<16x128xf32>
    %183 = arith.mulf %182, %46 : vector<16x128xf32>
    %cst_28 = arith.constant 0.000000e+00 : f32
    %184 = vector.broadcast %cst_28 : f32 to vector<16x128xf32>
    %185 = arith.cmpf oge, %181, %184 : vector<16x128xf32>
    %cst_29 = arith.constant 9.99999997E-7 : f32
    %186 = vector.broadcast %cst_29 : f32 to vector<16x128xf32>
    %187 = arith.addf %183, %186 : vector<16x128xf32>
    %188 = tpu.reciprocal %187 : vector<16x128xf32> -> vector<16x128xf32>
    %189 = arith.mulf %181, %188 : vector<16x128xf32>
    %cst_30 = arith.constant 0.000000e+00 : f32
    %190 = vector.broadcast %cst_30 : f32 to vector<16x128xf32>
    %191 = arith.select %185, %190, %189 : vector<16x128xi1>, vector<16x128xf32>
    %192 = arith.mulf %191, %179 : vector<16x128xf32>
    %193 = arith.subf %174, %192 : vector<16x128xf32>
    %194 = vector.shape_cast %193 : vector<16x128xf32> to vector<1x16x128xf32>
    %195 = vector.broadcast %194 : vector<1x16x128xf32> to vector<3x16x128xf32>
    %196 = arith.mulf %195, %29 : vector<3x16x128xf32>
    %cst_31 = arith.constant dense<0xFF800000> : vector<3x128xf32>
    %197 = vector.multi_reduction <maximumf>, %196, %cst_31 [1] : vector<3x16x128xf32> to vector<3x128xf32>
    %198 = vector.shape_cast %197 : vector<3x128xf32> to vector<3x1x128xf32>
    %199 = vector.broadcast %198 : vector<3x1x128xf32> to vector<3x16x128xf32>
    %200 = arith.subf %196, %199 : vector<3x16x128xf32>
    %201 = math.exp %200 : vector<3x16x128xf32>
    %cst_32 = arith.constant dense<0.000000e+00> : vector<3x128xf32>
    %202 = vector.multi_reduction <add>, %201, %cst_32 [1] : vector<3x16x128xf32> to vector<3x128xf32>
    %203 = vector.shape_cast %202 : vector<3x128xf32> to vector<3x1x128xf32>
    %204 = tpu.reciprocal %203 : vector<3x1x128xf32> -> vector<3x1x128xf32>
    %205 = vector.broadcast %204 : vector<3x1x128xf32> to vector<3x16x128xf32>
    %206 = arith.mulf %201, %205 : vector<3x16x128xf32>
    %207 = arith.mulf %29, %206 : vector<3x16x128xf32>
    %c0_33 = arith.constant 0 : index
    %c0_34 = arith.constant 0 : index
    %c0_35 = arith.constant 0 : index
    %c0_36 = arith.constant 0 : index
    %208 = vector.load %arg9[%c0_33, %c0_34, %c0_35, %c0_36] : memref<1x3x16x128xf32, #tpu.memory_space<vmem>>, vector<1x3x16x128xf32>
    %209 = vector.shape_cast %208 : vector<1x3x16x128xf32> to vector<3x16x128xf32>
    %210 = vector.shape_cast %207 : vector<3x16x128xf32> to vector<1x3x16x128xf32>
    tpu.vector_store %arg9[%c0_33, %c0_34, %c0_35, %c0_36], %210 {strides = array<i32>} : memref<1x3x16x128xf32, #tpu.memory_space<vmem>>, vector<1x3x16x128xf32>,
    %c0_37 = arith.constant 0 : index
    %c0_38 = arith.constant 0 : index
    %c0_39 = arith.constant 0 : index
    %c0_40 = arith.constant 0 : index
    %211 = vector.load %arg10[%c0_37, %c0_38, %c0_39, %c0_40] : memref<1x3x16x128xf32, #tpu.memory_space<vmem>>, vector<1x3x16x128xf32>
    %212 = vector.shape_cast %211 : vector<1x3x16x128xf32> to vector<3x16x128xf32>
    %213 = vector.shape_cast %206 : vector<3x16x128xf32> to vector<1x3x16x128xf32>
    tpu.vector_store %arg10[%c0_37, %c0_38, %c0_39, %c0_40], %213 {strides = array<i32>} : memref<1x3x16x128xf32, #tpu.memory_space<vmem>>, vector<1x3x16x128xf32>,
    return
  }
  func.func @transform_0(%arg0: i32, %arg1: i32) -> (i32, i32, i32, i32) {
    %c0_i32 = arith.constant 0 : i32
    %c0_i32_0 = arith.constant 0 : i32
    %c0_i32_1 = arith.constant 0 : i32
    return %arg0, %c0_i32, %c0_i32_0, %arg1 : i32, i32, i32, i32
  }
  func.func @transform_1(%arg0: i32, %arg1: i32) -> (i32, i32) {
    %c0_i32 = arith.constant 0 : i32
    %c0_i32_0 = arith.constant 0 : i32
    %c0_i32_1 = arith.constant 0 : i32
    return %c0_i32, %c0_i32_0 : i32, i32
  }
  func.func @transform_2(%arg0: i32, %arg1: i32) -> (i32, i32) {
    %c0_i32 = arith.constant 0 : i32
    %c0_i32_0 = arith.constant 0 : i32
    %c0_i32_1 = arith.constant 0 : i32
    return %c0_i32, %c0_i32_0 : i32, i32
  }
  func.func @transform_3(%arg0: i32, %arg1: i32) -> i32 {
    %c0_i32 = arith.constant 0 : i32
    %c0_i32_0 = arith.constant 0 : i32
    return %c0_i32 : i32
  }
  func.func @transform_4(%arg0: i32, %arg1: i32) -> i32 {
    %c0_i32 = arith.constant 0 : i32
    %c0_i32_0 = arith.constant 0 : i32
    return %c0_i32 : i32
  }
  func.func @transform_5(%arg0: i32, %arg1: i32) -> i32 {
    %c0_i32 = arith.constant 0 : i32
    %c0_i32_0 = arith.constant 0 : i32
    return %c0_i32 : i32
  }
  func.func @transform_6(%arg0: i32, %arg1: i32) -> i32 {
    %c0_i32 = arith.constant 0 : i32
    %c0_i32_0 = arith.constant 0 : i32
    return %c0_i32 : i32
  }
  func.func @transform_7(%arg0: i32, %arg1: i32) -> (i32, i32, i32, i32) {
    %c0_i32 = arith.constant 0 : i32
    %c0_i32_0 = arith.constant 0 : i32
    %c0_i32_1 = arith.constant 0 : i32
    return %arg0, %c0_i32, %c0_i32_0, %arg1 : i32, i32, i32, i32
  }
  func.func @transform_8(%arg0: i32, %arg1: i32) -> (i32, i32, i32, i32) {
    %c0_i32 = arith.constant 0 : i32
    %c0_i32_0 = arith.constant 0 : i32
    %c0_i32_1 = arith.constant 0 : i32
    return %arg0, %c0_i32, %c0_i32_0, %arg1 : i32, i32, i32, i32
  }
}

</mosaic_0001>

<bundles_post_ra>
// kernel: tpu_custom_call.1
= control target key start
LH: loop header
LB: loop body
LE: loop exit
PB: predicated region body
PF: predicated region fallthrough
CT: control target
= control target key end

     0   :  { %s1943_s0 = inlined_call_operand.hbm [shape: f32[2,3,16,128], index: 0, kind: input, shape index: {}]   ;;  %s1944_s1 = inlined_call_operand.vmem [shape: f32[16,1], index: 1, kind: input, shape index: {}]   ;;  %s1945_s2 = inlined_call_operand.vmem [shape: f32[16,1], index: 2, kind: input, shape index: {}]   ;;  %s1946_s3 = inlined_call_operand.vmem [shape: f32[4], index: 3, kind: input, shape index: {}]   ;;  %s1947_s4 = inlined_call_operand.vmem [shape: f32[4], index: 4, kind: input, shape index: {}]   ;;  %s1948_s5 = inlined_call_operand.vmem [shape: f32[4], index: 5, kind: input, shape index: {}]   ;;  %s1949_s6 = inlined_call_operand.vmem [shape: f32[4], index: 6, kind: input, shape index: {}]   ;;  %s1950_s7 = inlined_call_operand.hbm [shape: f32[2,3,16,128], index: 7, kind: output, shape index: {0}]   ;;  %s1951_s8 = inlined_call_operand.hbm [shape: f32[2,3,16,128], index: 8, kind: output, shape index: {1}]  }
   0x1   :  { %1956 = sst [smem:[#allocation21_spill]] %s1943_s0 }
   0x2   :  { %1957 = sst [smem:[#allocation22_spill]] %s1944_s1 }
   0x3   :  { %1958 = sst [smem:[#allocation23_spill]] %s1945_s2 }
   0x4   :  { %1959 = sst [smem:[#allocation24_spill]] %s1946_s3 }
   0x5   :  { %1960 = sst [smem:[#allocation25_spill]] %s1947_s4 }
   0x6   :  { %1961 = sst [smem:[#allocation26_spill]] %s1948_s5 }
   0x7   :  { %1962 = sst [smem:[#allocation27_spill]] %s1949_s6 }
   0x8   :  { %14 = vsyncpa [#allocation3], 0 }
   0x9   :  { %16 = vsyncpa [#allocation3 + $0x1], 0 }
   0xa   :  { %17 = vsyncpa [#allocation5], 0 }
   0xb   :  { %18 = vsyncpa [#allocation8], 0 }
   0xc   :  { %19 = vsyncpa [#allocation11], 0 }
   0xd   :  { %20 = vsyncpa [#allocation4], 0 }
   0xe   :  { %22 = vsyncpa [#allocation4 + $0x1], 0 }
   0xf   :  { %23 = vsyncpa [#allocation14], 0 }
  0x10   :  { %25 = vsyncpa [#allocation14 + $0x1], 0  ;;  %s1468_s27 = smov 0   ;;  %s1470_s28 = smov 0  }
  0x11   :  { %s1472_s29 = smov 0   ;;  %s1474_s30 = smov 0  }
  0x12   :  { %s1476_s9 = smov 0   ;;  %s1478_s10 = smov 0  }
  0x13 LB: > { %s999_s11 = sadd.s32 4294967295, %s1409_s10   ;;  %s1000_s12 = sadd.s32 4294967294, %s1409_s10   ;;  %s1409_s10 = sphi %s1478_s10, %s31_s10   ;;  %s1405_s9 = sphi %s1476_s9, %s1988_s9   ;;  %s1401_s30 = sphi %s1474_s30, %s1987_s30   ;;  %s1397_s29 = sphi %s1472_s29, %s1986_s29   ;;  %s1393_s28 = sphi %s1470_s28, %s1985_s28   ;;  %s1389_s27 = sphi %s1468_s27, %s1984_s27  }
  0x14   : > { %p65_p0 = scmp.ne.s32.totalorder %s1393_s28, %s1389_s27  ;;  %p1502_p1 = scmp.eq.s32.totalorder %s999_s11, 0 }
  0x15   : > { %p1506_p2 = scmp.eq.s32.totalorder %s999_s11, 1  ;;  %p223_p3 = scmp.eq.s32.totalorder %s1000_s12, 1 }
  0x16   : > { %s1963_s13 = scalar_select %p1502_p1, 1, 0 }
  0x17   : > { %s1964_s14 = scalar_select %p1506_p2, 1, 0 }
  0x18   : > { %p1512_p4 = por %p1502_p1, %p65_p0  ;;  %p1001_p5 = scmp.ge.s32.totalorder %s1409_s10, 1 }
  0x19   : > { %p1517_p6 = por %p223_p3, %p65_p0  ;;  %p258_p7 = scmp.lt.s32.totalorder %s1409_s10, 3 }
  0x1a   : > { %s1965_s15 = scalar_select %p1512_p4, 1, 0 }
  0x1b   : > { %s1966_s16 = scalar_select %p1517_p6, 1, 0 }
  0x1c   : > { %s1967_s4 = sld [smem:[#allocation25_spill]]  ;;  %p1525_p8 = pnand %p1001_p5, %p258_p7 }
  0x1d   : > { %s1969_s3 = sld [smem:[#allocation24_spill]]  ;;  %s1971_s5 = sld [smem:[#allocation26_spill]] }
  0x1e   : > { %s1968_s20 = scalar_select %p1525_p8, 1, 0 }
  0x1f   : > { %p1056_p10 = pneg %p1525_p8 }
  0x21   : > { %p1537_p11 = pnand %p1056_p10, %p1502_p1 }
  0x22   : > { %s288_s19 = sshll.u32 %s1967_s4, 4  ;;  %s289_s19 = int_to_ptr.vmem [resolvable:$true] %s288_s19 }
  0x23   : > { %s277_s23 = sshll.u32 %s1969_s3, 4  ;;  %s299_s11 = sshll.u32 %s1971_s5, 4  ;;  %s278_s23 = int_to_ptr.vmem [resolvable:$true] %s277_s23  ;;  %s1544_s11 = int_to_ptr.vmem [resolvable:$true] %s299_s11 }
  0x24   : > { %s1193_s12 = scalar_lea.vmem %s289_s19, 16  ;;  %p1195_p13 = pneg %p1537_p11 }
  0x25   : > { %p1194_p12 = scmp.ne.s32.totalorder %s289_s19, %s1193_s12  ;;  %p1201_p5 = scmp.lt.s32.totalorder %s289_s19, %s289_s19 }
  0x26   : > { %p1202_p7 = scmp.lt.s32.totalorder %s1193_s12, %s1193_s12 }
  0x27   : > { %p1196_p0 = pnand %p1195_p13, %p1194_p12 }
  0x28   : > { %p1203_p10 = por %p1202_p7, %p1201_p5 }
  0x29   : > { %p1197_p3 = pneg %p1196_p0 }
  0x2b   : > { %p1204_p9 = pnand %p1203_p10, %p1197_p3 }
  0x2d   : > { %1207 = shalt.err (!%p1204_p9)
}
  0x2e   : > { %s1411_s17 = smov [#allocation7]   ;;  %s1208_s18 = scalar_lea.vmem %s278_s23, 16 }
  0x2f   : > { %1062 = dma.vmem_to_smem (!%p1537_p11), %s289_s19, 16, %s1411_s17, [#allocation8]  }
  0x30   : > { %p1209_p6 = scmp.ne.s32.totalorder %s278_s23, %s1208_s18  ;;  %p1216_p8 = scmp.lt.s32.totalorder %s278_s23, %s278_s23 }
  0x31   : > { %p1217_p2 = scmp.lt.s32.totalorder %s1208_s18, %s1208_s18 }
  0x32   : > { %p1211_p1 = pnand %p1209_p6, %p1195_p13 }
  0x33   : > { %p1218_p12 = por %p1217_p2, %p1216_p8 }
  0x34   : > { %p1212_p4 = pneg %p1211_p1 }
  0x36   : > { %p1219_p0 = pnand %p1218_p12, %p1212_p4 }
  0x38   : > { %1222 = shalt.err (!%p1219_p0)
}
  0x39   : > { %s1412_s21 = smov [#allocation6]   ;;  %s1972_s6 = sld [smem:[#allocation27_spill]] }
  0x3a   : > { %1059 = dma.vmem_to_smem (!%p1537_p11), %s278_s23, 16, %s1412_s21, [#allocation5]  }
  0x3b   : > { %s1223_s26 = scalar_lea.vmem %s1544_s11, 16  ;;  %p1231_p4 = scmp.lt.s32.totalorder %s1544_s11, %s1544_s11 }
  0x3c   : > { %p1224_p6 = scmp.ne.s32.totalorder %s1544_s11, %s1223_s26  ;;  %p1232_p8 = scmp.lt.s32.totalorder %s1223_s26, %s1223_s26 }
  0x3e   : > { %p1226_p1 = pnand %p1224_p6, %p1195_p13  ;;  %p1233_p9 = por %p1232_p8, %p1231_p4 }
  0x3f   : > { %s310_s25 = sshll.u32 %s1972_s6, 4  ;;  %s311_s25 = int_to_ptr.vmem [resolvable:$true] %s310_s25 }
  0x40   : > { %p1227_p2 = pneg %p1226_p1 }
  0x42   : > { %p1234_p3 = pnand %p1233_p9, %p1227_p2 }
  0x44   : > { %1237 = shalt.err (!%p1234_p3)
}
  0x45   : > { %s1413_s12 = smov [#allocation9]   ;;  %s1238_s23 = scalar_lea.vmem %s311_s25, 16 }
  0x46   : > { %1065 = dma.vmem_to_smem (!%p1537_p11), %s1544_s11, 16, %s1413_s12, [#allocation8]  }
  0x47   : > { %p1239_p5 = scmp.ne.s32.totalorder %s311_s25, %s1238_s23  ;;  %p1246_p12 = scmp.lt.s32.totalorder %s311_s25, %s311_s25 }
  0x48   : > { %p1247_p0 = scmp.lt.s32.totalorder %s1238_s23, %s1238_s23 }
  0x49   : > { %p1241_p7 = pnand %p1239_p5, %p1195_p13 }
  0x4a   : > { %p1248_p6 = por %p1247_p0, %p1246_p12 }
  0x4b   : > { %p1242_p10 = pneg %p1241_p7 }
  0x4d   : > { %p1249_p1 = pnand %p1248_p6, %p1242_p10 }
  0x4f   : > { %1252 = shalt.err (!%p1249_p1)
}
  0x50   : > { %s1414_s17 = smov [#allocation10]   ;;  %s43_s11 = sadd.s32 1, %s1405_s9 }
  0x51   : > { %1068 = dma.vmem_to_smem (!%p1537_p11), %s311_s25, 16, %s1414_s17, [#allocation11]  }
  0x52   : > { %s52_s18 = sadd.s32 1, %s1397_s29  ;;  %p45_p13 = scmp.ge.s32.totalorder %s43_s11, 2 }
  0x53   : > { %p59_p2 = scmp.ne.s32.totalorder %s1397_s29, %s1393_s28  ;;  %p60_p4 = scmp.eq.s32.totalorder %s1409_s10, 0 }
  0x54   : > { %p1084_p8 = scmp.lt.s32.totalorder %s1409_s10, 2  ;;  %s1990_s11 = smov (%p45_p13, %s43_s11), 0 }
  0x55   : > { %p61_p9 = por %p60_p4, %p59_p2  ;;  %p1973_p3 = scmp.ne.s32.totalorder %s1964_s14, 0 }
  0x56   : > { %s47_s21 = ssub.s32 %s1405_s9, %s1990_s11  ;;  %s321_s19 = sand.u32 1, %s1397_s29  }
  0x57   : > { %p1586_p5 = por %p1973_p3, %p59_p2  ;;  %p50_p7 = scmp.eq.s32.totalorder %s47_s21, 0 }
  0x58   : > { %s1029_s22 = smul.u32 48, %s321_s19  ;;  %p1593_p11 = pnand %p1084_p8, %p61_p9 }
  0x59   : > { %s1598_s26 = scalar_select %p50_p7, %s1397_s29, %s52_s18  }
  0x5a   : > { %s1030_s12 = smul.u32 768, %s1405_s9  ;;  %s325_s23 = scalar_lea.vmem [#allocation2], %s1029_s22 }
  0x5b   : > { %s333_s17 = sshll.u32 %s325_s23, 4  ;;  %s1976_s0 = sld [smem:[#allocation21_spill]]  ;;  %s1606_s17 = int_to_ptr.vmem [resolvable:$true] %s333_s17 }
  0x5c   : > { %s1608_s21 = scalar_lea.sflag [#allocation3], %s321_s19  ;;  %p1255_p12 = pneg %p1593_p11 }
  0x61   : > { %s1604_s4 = scalar_lea.hbm %s1976_s0, %s1030_s12  ;;  %s1258_s22 = scalar_lea.hbm %s1976_s0, 1536 }
  0x62   : > { %s1253_s5 = scalar_lea.hbm %s1604_s4, 768  ;;  %p1259_p1 = scmp.lt.u32.totalorder %s1604_s4, %s1976_s0 }
  0x63   : > { %p1254_p10 = scmp.ne.s32.totalorder %s1604_s4, %s1253_s5  ;;  %p1260_p13 = scmp.lt.u32.totalorder %s1258_s22, %s1253_s5 }
  0x64   : > { %p1262_p4 = scmp.lt.u32.totalorder %s1253_s5, %s1604_s4 }
  0x65   : > { %p1256_p0 = pnand %p1255_p12, %p1254_p10  ;;  %p1261_p2 = por %p1260_p13, %p1259_p1 }
  0x67   : > { %p1257_p6 = pneg %p1256_p0  ;;  %p1263_p8 = por %p1262_p4, %p1261_p2 }
  0x69   : > { %p1264_p9 = pnand %p1263_p8, %p1257_p6 }
  0x6b   : > { %1267 = shalt.err (!%p1264_p9)
}
  0x6c   : > { %s1268_s19 = scalar_lea.vmem %s1606_s17, 768  ;;  %s1415_s14 = smov [#allocation2]  }
  0x6d   : > { %p1269_p3 = scmp.ne.s32.totalorder %s1606_s17, %s1268_s19  ;;  %s1273_s18 = sshll.u32 %s1415_s14, 4  ;;  %s1274_s18 = int_to_ptr.vmem [resolvable:$false] %s1273_s18 }
  0x6e   : > { %s1275_s3 = scalar_lea.vmem %s1274_s18, 1536  ;;  %p1276_p0 = scmp.lt.s32.totalorder %s1606_s17, %s1274_s18 }
  0x6f   : > { %p1271_p7 = pnand %p1269_p3, %p1255_p12  ;;  %p1277_p1 = scmp.lt.s32.totalorder %s1275_s3, %s1268_s19 }
  0x71   : > { %p1272_p10 = pneg %p1271_p7  ;;  %p1278_p13 = por %p1277_p1, %p1276_p0 }
  0x73   : > { %p1279_p2 = pnand %p1278_p13, %p1272_p10 }
  0x75   : > { %1282 = shalt.err (!%p1279_p2)
}
  0x76   : > { %s1416_s5 = smov 128   ;;  %s1417_s22 = smov 8  }
  0x77   : > { %1072 = dma.hbm_to_vmem [thread:$0]  (!%p1593_p11), %s1604_s4, 768, %s1606_s17, %s1608_s21, %s1416_s5, %s1416_s5, %s1417_s22  }
  0x78   : > { %p1977_p12 = scmp.ne.s32.totalorder %s1968_s20, 0 }
  0x79   : > { %s1639_s12 = sand.u32 (!%p1977_p12), 1, %s1393_s28   ;;  %p1978_p6 = scmp.ne.s32.totalorder (!%p1977_p12), %s1965_s15, 0 }
  0x7a   : > { %345 = sbr.rel (%p1977_p12) target bundleno = 449 (0x1c1), region = 48  ;;  %s348_s19 = scalar_lea.sflag (!%p1977_p12), [#allocation3], %s1639_s12 }
  0x7b   : > { %s1642_s23 = smul.u32 (!%p1977_p12), 48, %s1639_s12 }
  0x7d   : > { %s351_s14 = scalar_lea.vmem (!%p1977_p12), [#allocation2], %s1642_s23 }
  0x81   : > { %1364 = dma.done.wait (%p1978_p6), %s348_s19, 768  }
  0x82   : > { %1366 = vsyncadd (%p1978_p6), %s348_s19, 4294966528  ;;  %p1979_p11 = scmp.ne.s32.totalorder %s1963_s13, 0 }
  0x84   : > { %1368 = dma.done.wait (%p1979_p11), [#allocation5], 16  }
  0x85   : > { %1370 = vsyncadd (%p1979_p11), [#allocation5], 4294967280 }
  0x86   : > { %1372 = dma.done.wait (%p1979_p11), [#allocation8], 32  }
  0x87   : > { %1374 = vsyncadd (%p1979_p11), [#allocation8], 4294967264 }
  0x88   : > { %1376 = dma.done.wait (%p1979_p11), [#allocation11], 16  }
  0x89   : > { %1378 = vsyncadd (%p1979_p11), [#allocation11], 4294967280 }
  0x8a   : > { %372 = sfence }
  0x8b   : > { %s1980_s2 = sld [smem:[#allocation23_spill]]  ;;  %s1981_s1 = sld [smem:[#allocation22_spill]]  ;;  %v1418_v2 = vmov 0   ;;  %v406_v5 = vld [vmem:[%s351_s14] sm:$0xff]  ;;  %v407_v6 = vld [vmem:[%s351_s14 + $0x8] sm:$0xff]  ;;  %v408_v7 = vld [vmem:[%s351_s14 + $0x10] sm:$0xff] }
  0x8c   : > { %1148 = vset.pattern.permute.xlu1 %v1418_v2  ;;  %1147 = vset.pattern.permute.xlu0 %v1418_v2  ;;  %v409_v8 = vld [vmem:[%s351_s14 + $0x18] sm:$0xff]  ;;  %v410_v9 = vld [vmem:[%s351_s14 + $0x20] sm:$0xff]  ;;  %v411_v10 = vld [vmem:[%s351_s14 + $0x28] sm:$0xff]  ;;  %v416_v11 = vadd.f32 %v407_v6, %v406_v5  ;;  %s1674_s3 = sld [smem:[#allocation7]]  ;;  %s1676_s5 = sld [smem:[#allocation7 + $0x1]] }
  0x8d   : > { %v423_v12 = vadd.f32 %v409_v8, %v408_v7  ;;  %v430_v13 = vadd.f32 %v411_v10, %v410_v9  ;;  %s1678_s22 = sld [smem:[#allocation7 + $0x2]]  ;;  %s1680_s19 = sld [smem:[#allocation7 + $0x3]] }
  0x8e   : > { %v417_v14 = vrot.slane %v416_v11, 4  ;;  %s1700_s25 = sld [smem:[#allocation6]]  ;;  %s1702_s17 = sld [smem:[#allocation6 + $0x1]] }
  0x8f   : > { %v424_v15 = vrot.slane %v423_v12, 4  ;;  %v431_v16 = vrot.slane %v430_v13, 4  ;;  %s1708_s21 = sld [smem:[#allocation6 + $0x2]]  ;;  %s1712_s13 = sld [smem:[#allocation6 + $0x3]] }
  0x90   : > { %v418_v17 = vadd.f32 %v417_v14, %v416_v11 }
  0x91   : > { %v414_v0 = vld [vmem:[%s1980_s2] sm:$0xff]  ;;  %v415_v3 = vld [vmem:[%s1980_s2 + $0x8] sm:$0xff]  ;;  %v425_v18 = vadd.f32 %v424_v15, %v423_v12  ;;  %v432_v19 = vadd.f32 %v431_v16, %v430_v13 }
  0x92   : > { %v412_v1 = vld [vmem:[%s1981_s1] sm:$0xff]  ;;  %507 = vperm.xlu1 %1148, %v414_v0   ;;  %v413_v4 = vld [vmem:[%s1981_s1 + $0x8] sm:$0xff]  ;;  %v419_v20 = vrot.slane %v418_v17, 2  ;;  %s537_s14 = smul.f32 %s1674_s3, %s1674_s3 }
  0x93   : > { %491 = vperm.xlu0 %1147, %v412_v1   ;;  %v426_v21 = vrot.slane %v425_v18, 2  ;;  %v433_v22 = vrot.slane %v432_v19, 2  ;;  %s576_s4 = smul.f32 %s1676_s5, %s1676_s5 }
  0x94   : > { %v420_v23 = vadd.f32 %v419_v20, %v418_v17  ;;  %s615_s15 = smul.f32 %s1678_s22, %s1678_s22 }
  0x95   : > { %v427_v24 = vadd.f32 %v426_v21, %v425_v18  ;;  %v434_v25 = vadd.f32 %v433_v22, %v432_v19  ;;  %s654_s20 = smul.f32 %s1680_s19, %s1680_s19 }
  0x96   : > { %512 = vperm.xlu1 %1148, %v415_v3   ;;  %v421_v26 = vrot.slane %v420_v23, 1  ;;  %s533_s18 = smul.f32 %s1674_s3, %s1700_s25 }
  0x97   : > { %496 = vperm.xlu0 %1147, %v413_v4   ;;  %v428_v27 = vrot.slane %v427_v24, 1  ;;  %v435_v28 = vrot.slane %v434_v25, 1  ;;  %s650_s0 = smul.f32 %s1680_s19, %s1712_s13 }
  0x98   : > { %v422_v29 = vadd.f32 %v421_v26, %v420_v23  ;;  %s551_s1 = smul.f32 0.8, %s1674_s3 }
  0x99   : > { %v429_v30 = vadd.f32 %v428_v27, %v427_v24  ;;  %v436_v31 = vadd.f32 %v435_v28, %v434_v25  ;;  %s590_s2 = smul.f32 0.8, %s1676_s5 }
  0x9a   : > { %v438_v32 = vmul.f32 0.0625, %v422_v29  ;;  %s629_s6 = smul.f32 0.8, %s1678_s22 }
  0x9b   : > { %v439_v33 = vmul.f32 0.0625, %v429_v30  ;;  %v440_v34 = vmul.f32 0.0625, %v436_v31  ;;  %s668_s3 = smul.f32 0.8, %s1680_s19  ;;  %s405_s19 = scalar_lea.vmem [#allocation13], %s1642_s23 }
  0x9c   : > { %v441_v35 = vsub.f32 %v406_v5, %v438_v32  ;;  %v442_v36 = vsub.f32 %v407_v6, %v438_v32 }
  0x9d   : > { %v443_v37 = vsub.f32 %v408_v7, %v439_v33  ;;  %v444_v38 = vsub.f32 %v409_v8, %v439_v33  ;;  %v445_v39 = vsub.f32 %v410_v9, %v440_v34  ;;  %v446_v40 = vsub.f32 %v411_v10, %v440_v34 }
  0x9e   : > { %v447_v41 = vmul.f32 %v441_v35, %v441_v35  ;;  %v448_v42 = vmul.f32 %v442_v36, %v442_v36 }
  0x9f   : > { %v449_v43 = vmul.f32 %v443_v37, %v443_v37  ;;  %v450_v44 = vmul.f32 %v444_v38, %v444_v38  ;;  %v451_v45 = vmul.f32 %v445_v39, %v445_v39  ;;  %v452_v46 = vmul.f32 %v446_v40, %v446_v40 }
  0xa0   : > { %v453_v47 = vadd.f32 %v448_v42, %v447_v41  ;;  %v655_v41 = vstv %s654_s20  ;;  %s611_s20 = smul.f32 %s1678_s22, %s1708_s21  ;;  %s1768_s22 = sld [smem:[#allocation10 + $0x3]] }
  0xa1   : > { %v460_v48 = vadd.f32 %v450_v44, %v449_v43  ;;  %v467_v49 = vadd.f32 %v452_v46, %v451_v45 }
  0xa2   : > { %v454_v50 = vrot.slane %v453_v47, 4 }
  0xa3   : > { %v461_v51 = vrot.slane %v460_v48, 4  ;;  %v468_v52 = vrot.slane %v467_v49, 4 }
  0xa4   : > { %v455_v53 = vadd.f32 %v454_v50, %v453_v47 }
  0xa5   : > { %v462_v54 = vadd.f32 %v461_v51, %v460_v48  ;;  %v469_v55 = vadd.f32 %v468_v52, %v467_v49 }
  0xa6   : > { %v456_v56 = vrot.slane %v455_v53, 2 }
  0xa7   : > { %v463_v57 = vrot.slane %v462_v54, 2  ;;  %v470_v58 = vrot.slane %v469_v55, 2 }
  0xa8   : > { %v457_v59 = vadd.f32 %v456_v56, %v455_v53 }
  0xa9   : > { %v464_v60 = vadd.f32 %v463_v57, %v462_v54  ;;  %v471_v61 = vadd.f32 %v470_v58, %v469_v55 }
  0xaa   : > { %v458_v62 = vrot.slane %v457_v59, 1 }
  0xab   : > { %v465_v63 = vrot.slane %v464_v60, 1  ;;  %v472_v0 = vrot.slane %v471_v61, 1 }
  0xac   : > { %v459_v1 = vadd.f32 %v458_v62, %v457_v59  ;;  %v534_v59 = vstv %s533_s18  ;;  %s1757_s18 = sld [smem:[#allocation9 + $0x1]] }
  0xad   : > { %v466_v2 = vadd.f32 %v465_v63, %v464_v60  ;;  %v473_v3 = vadd.f32 %v472_v0, %v471_v61  ;;  %v612_v63 = vstv %s611_s20  ;;  %v651_v0 = vstv %s650_s0  ;;  %s1765_s0 = sld [smem:[#allocation10 + $0x2]] }
  0xae   : > { %v474_v4 = vmul.f32 0.0625, %v459_v1 }
  0xaf   : > { %v475_v5 = vmul.f32 0.0625, %v466_v2  ;;  %v476_v6 = vmul.f32 0.0625, %v473_v3  ;;  %v555_v3 = vstv %s1700_s25  ;;  %s839_s25 = sshll.u32 %s405_s19, 4  ;;  %s1845_s25 = int_to_ptr.vmem [resolvable:$true] %s839_s25 }
  0xb0   : > { %v477_v7 = vadd.f32 1e-05, %v474_v4 }
  0xb1   : > { %v478_v8 = vadd.f32 1e-05, %v475_v5  ;;  %v479_v9 = vadd.f32 1e-05, %v476_v6 }
  0xb2   : > { %1149 = vrsqrt.f32 %v477_v7  ;;  %v594_v7 = vstv %s1702_s17 }
  0xb3   : > { %1151 = vrsqrt.f32 %v478_v8 }
  0xb4   : > { %1153 = vrsqrt.f32 %v479_v9 }
  0xbc   : > { %v1150_v10 = vpop.eup %1149 }
  0xbd   : > { %v1152_v11 = vpop.eup %1151  ;;  %v483_v13 = vmul.f32 %v1150_v10, %v441_v35  ;;  %v484_v21 = vmul.f32 %v1150_v10, %v442_v36 }
  0xbe   : > { %v1154_v12 = vpop.eup %1153  ;;  %v485_v14 = vmul.f32 %v1152_v11, %v443_v37  ;;  %v486_v22 = vmul.f32 %v1152_v11, %v444_v38  ;;  %v538_v37 = vstv %s537_s14  ;;  %v577_v38 = vstv %s576_s4  ;;  %s1728_s14 = sld [smem:[#allocation10]]  ;;  %s572_s4 = smul.f32 %s1676_s5, %s1702_s17 }
  0xbf   : > { %v487_v15 = vmul.f32 %v1154_v12, %v445_v39  ;;  %v488_v23 = vmul.f32 %v1154_v12, %v446_v40  ;;  %v616_v40 = vstv %s615_s15  ;;  %s1734_s15 = sld [smem:[#allocation10 + $0x1]]  ;;  %s1755_s5 = sld [smem:[#allocation9]] }
  0xc0   : > { %v573_v60 = vstv %s572_s4  ;;  %s1835_s17 = scalar_lea.vmem [#allocation12], %s1642_s23 }
  0xc4   : > { %v565_v4 = vstv %s1728_s14 }
  0xc5   : > { %v604_v10 = vstv %s1734_s15 }
 0x111   : > { %v508_v16 = vpop.permute.xlu1 %507 }
 0x112   : > { %v492_v17 = vpop.permute.xlu0 %491 }
 0x113   : > { %v499_v18 = vmul.f32 %v492_v17, %v483_v13  ;;  %v501_v19 = vmul.f32 %v492_v17, %v485_v14  ;;  %v503_v20 = vmul.f32 %v492_v17, %v487_v15  ;;  %v1762_v14 = vstv %s551_s1  ;;  %s1778_s1 = sld [smem:[#allocation9 + $0x2]] }
 0x114   : > { %v633_v15 = vstv %s1708_s21  ;;  %s822_s21 = sshll.u32 %s1835_s17, 4  ;;  %s1862_s21 = int_to_ptr.vmem [resolvable:$true] %s822_s21 }
 0x115   : > { %v1686_v24 = vadd.f32 %v508_v16, %v499_v18  ;;  %v1688_v25 = vadd.f32 %v508_v16, %v501_v19  ;;  %v1690_v26 = vadd.f32 %v508_v16, %v503_v20  ;;  %v513_v31 = vpop.permute.xlu1 %512  ;;  %v672_v16 = vstv %s1712_s13 }
 0x116   : > { %v497_v27 = vpop.permute.xlu0 %496  ;;  %v591_v18 = vstv %s590_s2  ;;  %v1770_v19 = vstv %s629_s6  ;;  %s1799_s2 = sld [smem:[#allocation9 + $0x3]]  ;;  %s1032_s6 = smul.u32 768, %s1401_s30 }
 0x117   : > { %v521_v28 = vmul.f32 %v1686_v24, %v1686_v24  ;;  %v523_v29 = vmul.f32 %v1688_v25, %v1688_v25  ;;  %v500_v30 = vmul.f32 %v497_v27, %v484_v21  ;;  %v502_v32 = vmul.f32 %v497_v27, %v486_v22 }
 0x118   : > { %v504_v33 = vmul.f32 %v497_v27, %v488_v23  ;;  %v527_v35 = vmul.f32 %v1690_v26, %v1690_v26  ;;  %v1772_v22 = vstv %s668_s3  ;;  %s1843_s4 = scalar_lea.hbm %s1951_s8, %s1032_s6  ;;  %s1860_s20 = scalar_lea.hbm %s1950_s7, %s1032_s6 }
 0x119   : > { %v525_v34 = vadd.f32 %v523_v29, %v521_v28  ;;  %v1706_v36 = vadd.f32 %v513_v31, %v500_v30  ;;  %v1710_v39 = vadd.f32 %v513_v31, %v502_v32  ;;  %s808_s3 = scalar_lea.sflag [#allocation14], %s1639_s12 }
 0x11a   : > { %v1716_v43 = vadd.f32 %v513_v31, %v504_v33 }
 0x11b   : > { %v1714_v42 = vadd.f32 %v527_v35, %v525_v34  ;;  %v522_v46 = vmul.f32 %v1706_v36, %v1706_v36  ;;  %v524_v47 = vmul.f32 %v1710_v39, %v1710_v39 }
 0x11c   : > { %v528_v55 = vmul.f32 %v1716_v43, %v1716_v43 }
 0x11d   : > { %v539_v44 = vmul.f32 %v538_v37, %v1714_v42  ;;  %v578_v45 = vmul.f32 %v577_v38, %v1714_v42  ;;  %v617_v48 = vmul.f32 %v616_v40, %v1714_v42  ;;  %v656_v49 = vmul.f32 %v655_v41, %v1714_v42 }
 0x11e   : > { %v526_v54 = vadd.f32 %v524_v47, %v522_v46  ;;  %v535_v8 = vmul.f32 %v534_v59, %v1714_v42  ;;  %v574_v9 = vmul.f32 %v573_v60, %v1714_v42  ;;  %v613_v11 = vmul.f32 %v612_v63, %v1714_v42 }
 0x11f   : > { %v543_v50 = vadd.f32 1e-06, %v539_v44  ;;  %v582_v51 = vadd.f32 1e-06, %v578_v45  ;;  %v621_v52 = vadd.f32 1e-06, %v617_v48  ;;  %v652_v12 = vmul.f32 %v651_v0, %v1714_v42 }
 0x120   : > { %v660_v53 = vadd.f32 1e-06, %v656_v49  ;;  %v1740_v56 = vadd.f32 %v528_v55, %v526_v54  ;;  %vm541_vm0 = vcmp.ge.f32.partialorder %v535_v8, 0.0  ;;  %vm580_vm1 = vcmp.ge.f32.partialorder %v574_v9, 0.0 }
 0x121   : > { %1155 = vrcp.f32 %v543_v50  ;;  %vm619_vm2 = vcmp.ge.f32.partialorder %v613_v11, 0.0  ;;  %vm658_vm3 = vcmp.ge.f32.partialorder %v652_v12, 0.0  ;;  %v559_v46 = vstv %s1755_s5  ;;  %s1283_s5 = scalar_lea.vmem %s1845_s25, 768 }
 0x122   : > { %1157 = vrcp.f32 %v582_v51  ;;  %v540_v57 = vmul.f32 %v538_v37, %v1740_v56  ;;  %v579_v58 = vmul.f32 %v577_v38, %v1740_v56  ;;  %v618_v61 = vmul.f32 %v616_v40, %v1740_v56  ;;  %p1284_p4 = scmp.ne.s32.totalorder %s1845_s25, %s1283_s5 }
 0x123   : > { %1159 = vrcp.f32 %v621_v52  ;;  %v657_v62 = vmul.f32 %v655_v41, %v1740_v56  ;;  %v536_v33 = vmul.f32 %v534_v59, %v1740_v56  ;;  %v575_v37 = vmul.f32 %v573_v60, %v1740_v56 }
 0x124   : > { %1161 = vrcp.f32 %v660_v53  ;;  %v544_v1 = vadd.f32 1e-06, %v540_v57  ;;  %v583_v2 = vadd.f32 1e-06, %v579_v58  ;;  %v622_v5 = vadd.f32 1e-06, %v618_v61  ;;  %p1285_p8 = pnand %p1284_p4, %p1586_p5 }
 0x125   : > { %v661_v6 = vadd.f32 1e-06, %v657_v62  ;;  %v614_v38 = vmul.f32 %v612_v63, %v1740_v56  ;;  %v653_v45 = vmul.f32 %v651_v0, %v1740_v56  ;;  %v598_v47 = vstv %s1757_s18  ;;  %s1419_s18 = smov [#allocation13]  }
 0x126   : > { %1163 = vrcp.f32 %v544_v1  ;;  %v643_v51 = vstv %s1765_s0  ;;  %v682_v52 = vstv %s1768_s22  ;;  %vm542_vm4 = vcmp.ge.f32.partialorder %v536_v33, 0.0  ;;  %p1286_p9 = pneg %p1285_p8  ;;  %s1287_s0 = sshll.u32 %s1419_s18, 4  ;;  %s1288_s0 = int_to_ptr.vmem [resolvable:$false] %s1287_s0 }
 0x127   : > { %1165 = vrcp.f32 %v583_v2  ;;  %vm581_vm5 = vcmp.ge.f32.partialorder %v575_v37, 0.0  ;;  %vm620_vm6 = vcmp.ge.f32.partialorder %v614_v38, 0.0  ;;  %vm659_vm7 = vcmp.ge.f32.partialorder %v653_v45, 0.0  ;;  %s1289_s22 = scalar_lea.vmem %s1288_s0, 1536  ;;  %p1290_p3 = scmp.lt.s32.totalorder %s1845_s25, %s1288_s0 }
 0x128   : > { %1167 = vrcp.f32 %v622_v5  ;;  %p1291_p7 = scmp.lt.s32.totalorder %s1289_s22, %s1283_s5 }
 0x129   : > { %1169 = vrcp.f32 %v661_v6 }
 0x12a   : > { %p1292_p10 = por %p1291_p7, %p1290_p3 }
 0x12b   : > { %v1156_v13 = vpop.eup %1155 }
 0x12c   : > { %v1158_v17 = vpop.eup %1157  ;;  %v547_v20 = vmul.f32 %v1156_v13, %v535_v8  ;;  %p1293_p0 = pnand %p1292_p10, %p1286_p9 }
 0x12d   : > { %v1160_v21 = vpop.eup %1159  ;;  %v586_v23 = vmul.f32 %v1158_v17, %v574_v9 }
 0x12e   : > { %v1162_v27 = vpop.eup %1161  ;;  %v549_v28 = vsel %vm541_vm0, 0.0, %v547_v20  ;;  %v625_v29 = vmul.f32 %v1160_v21, %v613_v11  ;;  %v637_v20 = vstv %s1778_s1 }
 0x12f   : > { %v553_v30 = vmul.f32 %v1762_v14, %v549_v28  ;;  %v588_v31 = vsel %vm580_vm1, 0.0, %v586_v23  ;;  %v664_v32 = vmul.f32 %v1162_v27, %v652_v12 }
 0x130   : > { %v592_v34 = vmul.f32 %v591_v18, %v588_v31  ;;  %v627_v35 = vsel %vm619_vm2, 0.0, %v625_v29  ;;  %v1164_v50 = vpop.eup %1163 }
 0x131   : > { %v556_v40 = vsub.f32 %v555_v3, %v553_v30  ;;  %v631_v41 = vmul.f32 %v1770_v19, %v627_v35  ;;  %v666_v44 = vsel %vm658_vm3, 0.0, %v664_v32  ;;  %v1166_v55 = vpop.eup %1165  ;;  %v548_v59 = vmul.f32 %v1164_v50, %v536_v33 }
 0x132   : > { %v595_v48 = vsub.f32 %v594_v7, %v592_v34  ;;  %v670_v49 = vmul.f32 %v1772_v22, %v666_v44  ;;  %v1168_v60 = vpop.eup %1167  ;;  %v587_v61 = vmul.f32 %v1166_v55, %v575_v37 }
 0x133   : > { %v566_v53 = vmul.f32 %v565_v4, %v556_v40  ;;  %v634_v54 = vsub.f32 %v633_v15, %v631_v41  ;;  %v1170_v62 = vpop.eup %1169  ;;  %v560_v63 = vmul.f32 %v559_v46, %v556_v40  ;;  %v550_v5 = vsel %vm542_vm4, 0.0, %v548_v59 }
 0x134   : > { %v605_v57 = vmul.f32 %v604_v10, %v595_v48  ;;  %v673_v58 = vsub.f32 %v672_v16, %v670_v49  ;;  %v599_v0 = vmul.f32 %v598_v47, %v595_v48  ;;  %v589_v6 = vsel %vm581_vm5, 0.0, %v587_v61 }
 0x135   : > { %v644_v2 = vmul.f32 %v643_v51, %v634_v54  ;;  %v626_v8 = vmul.f32 %v1168_v60, %v614_v38  ;;  %v665_v9 = vmul.f32 %v1170_v62, %v653_v45  ;;  %v554_v13 = vmul.f32 %v1762_v14, %v550_v5 }
 0x136   : > { %v607_v1 = vadd.f32 %v605_v57, %v566_v53  ;;  %v683_v12 = vmul.f32 %v682_v52, %v673_v58  ;;  %v593_v17 = vmul.f32 %v591_v18, %v589_v6  ;;  %v601_v27 = vadd.f32 %v599_v0, %v560_v63 }
 0x137   : > { %v628_v21 = vsel %vm620_vm6, 0.0, %v626_v8  ;;  %v667_v23 = vsel %vm659_vm7, 0.0, %v665_v9  ;;  %v557_v29 = vsub.f32 %v555_v3, %v554_v13  ;;  %v638_v33 = vmul.f32 %v637_v20, %v634_v54 }
 0x138   : > { %v646_v11 = vadd.f32 %v644_v2, %v607_v1  ;;  %v596_v30 = vsub.f32 %v594_v7, %v593_v17  ;;  %v632_v31 = vmul.f32 %v1770_v19, %v628_v21  ;;  %v671_v32 = vmul.f32 %v1772_v22, %v667_v23 }
 0x139   : > { %v567_v18 = vmul.f32 %v565_v4, %v557_v29  ;;  %v676_v38 = vstv %s1799_s2  ;;  %v640_v40 = vadd.f32 %v638_v33, %v601_v27  ;;  %v561_v41 = vmul.f32 %v559_v46, %v557_v29 }
 0x13a   : > { %v685_v28 = vadd.f32 %v683_v12, %v646_v11  ;;  %v606_v34 = vmul.f32 %v604_v10, %v596_v30  ;;  %v635_v35 = vsub.f32 %v633_v15, %v632_v31  ;;  %v674_v37 = vsub.f32 %v672_v16, %v671_v32 }
 0x13b   : > { %v600_v7 = vmul.f32 %v598_v47, %v596_v30  ;;  %v677_v22 = vmul.f32 %v676_v38, %v673_v58 }
 0x13c   : > { %v691_v14 = vmul.f32 %v685_v28, %v685_v28  ;;  %v608_v44 = vadd.f32 %v606_v34, %v567_v18  ;;  %v645_v19 = vmul.f32 %v643_v51, %v635_v35  ;;  %v684_v49 = vmul.f32 %v682_v52, %v674_v37 }
 0x13d   : > { %v679_v4 = vadd.f32 %v677_v22, %v640_v40  ;;  %v602_v50 = vadd.f32 %v600_v7, %v561_v41  ;;  %v639_v53 = vmul.f32 %v637_v20, %v635_v35  ;;  %v678_v57 = vmul.f32 %v676_v38, %v674_v37 }
 0x13e   : > { %v693_v3 = vmul.f32 %v691_v14, %v1714_v42  ;;  %v647_v48 = vadd.f32 %v645_v19, %v608_v44 }
 0x13f   : > { %v687_v54 = vmul.f32 %v685_v28, %v679_v4  ;;  %v641_v16 = vadd.f32 %v639_v53, %v602_v50 }
 0x140   : > { %v697_v45 = vadd.f32 1e-06, %v693_v3  ;;  %v686_v10 = vadd.f32 %v684_v49, %v647_v48 }
 0x141   : > { %v689_v46 = vmul.f32 %v687_v54, %v1714_v42  ;;  %v680_v47 = vadd.f32 %v678_v57, %v641_v16 }
 0x142   : > { %1171 = vrcp.f32 %v697_v45  ;;  %v692_v15 = vmul.f32 %v686_v10, %v686_v10 }
 0x143   : > { %v688_v60 = vmul.f32 %v686_v10, %v680_v47  ;;  %vm695_vm8 = vcmp.ge.f32.partialorder %v689_v46, 0.0 }
 0x144   : > { %v694_v55 = vmul.f32 %v692_v15, %v1740_v56 }
 0x145   : > { %v690_v61 = vmul.f32 %v688_v60, %v1740_v56 }
 0x146   : > { %v698_v59 = vadd.f32 1e-06, %v694_v55 }
 0x147   : > { %vm696_vm9 = vcmp.ge.f32.partialorder %v690_v61, 0.0 }
 0x148   : > { %1173 = vrcp.f32 %v698_v59 }
 0x14c   : > { %v1172_v51 = vpop.eup %1171 }
 0x14d   : > { %v701_v58 = vmul.f32 %v1172_v51, %v689_v46 }
 0x14f   : > { %v703_v52 = vsel %vm695_vm8, 0.0, %v701_v58 }
 0x150   : > { %v705_v62 = vmul.f32 %v703_v52, %v685_v28 }
 0x152   : > { %v1174_v63 = vpop.eup %1173  ;;  %v707_v1 = vsub.f32 %v679_v4, %v705_v62 }
 0x153   : > { %v702_v0 = vmul.f32 %v1174_v63, %v690_v61 }
 0x154   : > { %v709_v8 = vmul.f32 %v707_v1, %v1686_v24  ;;  %v711_v42 = vmul.f32 %v707_v1, %v1688_v25  ;;  %v713_v9 = vmul.f32 %v707_v1, %v1690_v26 }
 0x155   : > { %v704_v2 = vsel %vm696_vm9, 0.0, %v702_v0 }
 0x156   : > { %v706_v5 = vmul.f32 %v704_v2, %v686_v10 }
 0x158   : > { %v708_v6 = vsub.f32 %v680_v47, %v706_v5 }
 0x15a   : > { %v710_v11 = vmul.f32 %v708_v6, %v1706_v36  ;;  %v712_v12 = vmul.f32 %v708_v6, %v1710_v39  ;;  %v714_v56 = vmul.f32 %v708_v6, %v1716_v43 }
 0x15c   : > { %v715_v13 = vmax.f32 %v709_v8, %v710_v11  ;;  %v722_v17 = vmax.f32 %v711_v42, %v712_v12  ;;  %v729_v20 = vmax.f32 %v713_v9, %v714_v56 }
 0x15e   : > { %v716_v21 = vrot.slane %v715_v13, 4  ;;  %v723_v23 = vrot.slane %v722_v17, 4  ;;  %v730_v27 = vrot.slane %v729_v20, 4 }
 0x160   : > { %v717_v28 = vmax.f32 %v715_v13, %v716_v21  ;;  %v724_v29 = vmax.f32 %v722_v17, %v723_v23  ;;  %v731_v30 = vmax.f32 %v729_v20, %v730_v27 }
 0x162   : > { %v718_v31 = vrot.slane %v717_v28, 2  ;;  %v725_v32 = vrot.slane %v724_v29, 2  ;;  %v732_v33 = vrot.slane %v731_v30, 2 }
 0x164   : > { %v719_v14 = vmax.f32 %v717_v28, %v718_v31  ;;  %v726_v18 = vmax.f32 %v724_v29, %v725_v32  ;;  %v733_v34 = vmax.f32 %v731_v30, %v732_v33 }
 0x166   : > { %v720_v35 = vrot.slane %v719_v14, 1  ;;  %v727_v37 = vrot.slane %v726_v18, 1  ;;  %v734_v38 = vrot.slane %v733_v34, 1 }
 0x168   : > { %v721_v40 = vmax.f32 %v719_v14, %v720_v35  ;;  %v728_v3 = vmax.f32 %v726_v18, %v727_v37  ;;  %v735_v41 = vmax.f32 %v733_v34, %v734_v38 }
 0x16a   : > { %v736_v7 = vsub.f32 %v709_v8, %v721_v40  ;;  %v737_v44 = vsub.f32 %v710_v11, %v721_v40  ;;  %v738_v19 = vsub.f32 %v711_v42, %v728_v3  ;;  %v739_v45 = vsub.f32 %v712_v12, %v728_v3 }
 0x16b   : > { %v740_v22 = vsub.f32 %v713_v9, %v735_v41  ;;  %v741_v48 = vsub.f32 %v714_v56, %v735_v41 }
 0x16c   : > { %v742_v49 = vmul.f32 1.442695, %v736_v7  ;;  %v744_v4 = vmul.f32 1.442695, %v737_v44  ;;  %v746_v50 = vmul.f32 1.442695, %v738_v19 }
 0x16d   : > { %v748_v10 = vmul.f32 1.442695, %v739_v45  ;;  %v750_v53 = vmul.f32 1.442695, %v740_v22  ;;  %v752_v15 = vmul.f32 1.442695, %v741_v48 }
 0x16e   : > { %1175 = vpow2.f32 %v742_v49 }
 0x16f   : > { %1177 = vpow2.f32 %v744_v4 }
 0x170   : > { %1179 = vpow2.f32 %v746_v50 }
 0x171   : > { %1181 = vpow2.f32 %v748_v10 }
 0x172   : > { %1183 = vpow2.f32 %v750_v53 }
 0x173   : > { %1185 = vpow2.f32 %v752_v15 }
 0x178   : > { %v1176_v54 = vpop.eup %1175 }
 0x179   : > { %v1178_v16 = vpop.eup %1177 }
 0x17a   : > { %v1180_v55 = vpop.eup %1179  ;;  %v754_v57 = vadd.f32 %v1178_v16, %v1176_v54 }
 0x17b   : > { %v1182_v59 = vpop.eup %1181 }
 0x17c   : > { %v1184_v46 = vpop.eup %1183  ;;  %v755_v47 = vrot.slane %v754_v57, 4  ;;  %v761_v51 = vadd.f32 %v1182_v59, %v1180_v55 }
 0x17d   : > { %v1186_v58 = vpop.eup %1185 }
 0x17e   : > { %v756_v60 = vadd.f32 %v755_v47, %v754_v57  ;;  %v762_v52 = vrot.slane %v761_v51, 4  ;;  %v768_v61 = vadd.f32 %v1186_v58, %v1184_v46 }
 0x180   : > { %v757_v62 = vrot.slane %v756_v60, 2  ;;  %v763_v63 = vadd.f32 %v762_v52, %v761_v51  ;;  %v769_v0 = vrot.slane %v768_v61, 4 }
 0x182   : > { %v758_v1 = vadd.f32 %v757_v62, %v756_v60  ;;  %v764_v2 = vrot.slane %v763_v63, 2  ;;  %v770_v5 = vadd.f32 %v769_v0, %v768_v61 }
 0x184   : > { %v759_v6 = vrot.slane %v758_v1, 1  ;;  %v765_v8 = vadd.f32 %v764_v2, %v763_v63  ;;  %v771_v42 = vrot.slane %v770_v5, 2 }
 0x186   : > { %v760_v9 = vadd.f32 %v759_v6, %v758_v1  ;;  %v766_v11 = vrot.slane %v765_v8, 1  ;;  %v772_v12 = vadd.f32 %v771_v42, %v770_v5 }
 0x188   : > { %v767_v56 = vadd.f32 %v766_v11, %v765_v8  ;;  %v773_v13 = vrot.slane %v772_v12, 1  ;;  %1187 = vrcp.f32 %v760_v9 }
 0x18a   : > { %v774_v17 = vadd.f32 %v773_v13, %v772_v12  ;;  %1189 = vrcp.f32 %v767_v56 }
 0x18c   : > { %1191 = vrcp.f32 %v774_v17 }
 0x192   : > { %v1188_v20 = vpop.eup %1187 }
 0x193   : > { %v778_v21 = vmul.f32 %v1188_v20, %v1176_v54  ;;  %v779_v23 = vmul.f32 %v1188_v20, %v1178_v16 }
 0x194   : > { %v1190_v27 = vpop.eup %1189 }
 0x195   : > { %v780_v28 = vmul.f32 %v1190_v27, %v1180_v55  ;;  %v781_v29 = vmul.f32 %v1190_v27, %v1182_v59  ;;  %v784_v30 = vmul.f32 %v778_v21, %v1686_v24  ;;  %v785_v31 = vmul.f32 %v779_v23, %v1706_v36  ;;  %796 = vst [vmem:[%s405_s19] sm:$0xff] %v778_v21 }
 0x196   : > { %797 = vst [vmem:[%s405_s19 + $0x8] sm:$0xff] %v779_v23  ;;  %v1192_v32 = vpop.eup %1191 }
 0x197   : > { %v782_v24 = vmul.f32 %v1192_v32, %v1184_v46  ;;  %v783_v36 = vmul.f32 %v1192_v32, %v1186_v58  ;;  %v786_v33 = vmul.f32 %v780_v28, %v1688_v25  ;;  %v787_v14 = vmul.f32 %v781_v29, %v1710_v39  ;;  %791 = vst [vmem:[%s1835_s17 + $0x8] sm:$0xff] %v785_v31 }
 0x198   : > { %798 = vst [vmem:[%s405_s19 + $0x10] sm:$0xff] %v780_v28  ;;  %799 = vst [vmem:[%s405_s19 + $0x18] sm:$0xff] %v781_v29 }
 0x199   : > { %790 = vst [vmem:[%s1835_s17] sm:$0xff] %v784_v30  ;;  %v788_v18 = vmul.f32 %v782_v24, %v1690_v26  ;;  %v789_v34 = vmul.f32 %v783_v36, %v1716_v43  ;;  %793 = vst [vmem:[%s1835_s17 + $0x18] sm:$0xff] %v787_v14 }
 0x19a   : > { %800 = vst [vmem:[%s405_s19 + $0x20] sm:$0xff] %v782_v24  ;;  %801 = vst [vmem:[%s405_s19 + $0x28] sm:$0xff] %v783_v36 }
 0x19b   : > { %792 = vst [vmem:[%s1835_s17 + $0x10] sm:$0xff] %v786_v33 }
 0x19c   : > { %1296 = shalt.err (!%p1293_p0)
}
 0x19d   : > { %s1297_s30 = scalar_lea.hbm %s1843_s4, 768  ;;  %s1301_s6 = scalar_lea.hbm %s1951_s8, 1536 }
 0x19e   : > { %p1298_p1 = scmp.ne.s32.totalorder %s1843_s4, %s1297_s30  ;;  %p1302_p12 = scmp.lt.u32.totalorder %s1843_s4, %s1951_s8 }
 0x19f   : > { %p1303_p6 = scmp.lt.u32.totalorder %s1301_s6, %s1297_s30  ;;  %p1305_p4 = scmp.lt.u32.totalorder %s1297_s30, %s1843_s4 }
 0x1a0   : > { %p1299_p13 = pnand %p1298_p1, %p1586_p5 }
 0x1a1   : > { %p1304_p11 = por %p1303_p6, %p1302_p12 }
 0x1a2   : > { %p1300_p2 = pneg %p1299_p13 }
 0x1a3   : > { %p1306_p8 = por %p1305_p4, %p1304_p11 }
 0x1a5   : > { %p1307_p9 = pnand %p1306_p8, %p1300_p2 }
 0x1a7   : > { %1310 = shalt.err (!%p1307_p9)
}
 0x1a8   : > { %s1420_s14 = smov 128   ;;  %s1421_s23 = smov 8   ;;  %795 = vst [vmem:[%s1835_s17 + $0x28] sm:$0xff] %v789_v34  ;;  %794 = vst [vmem:[%s1835_s17 + $0x20] sm:$0xff] %v788_v18 }
 0x1a9   : > { %1053 = dma.vmem_to_hbm [thread:$0]  (%p1586_p5), %s1845_s25, 768, %s1843_s4, %s808_s3, %s1420_s14, %s1420_s14, %s1421_s23  }
 0x1aa   : > { %s803_s15 = scalar_lea.sflag [#allocation4], %s1639_s12  ;;  %s1311_s5 = scalar_lea.vmem %s1862_s21, 768 }
 0x1ab   : > { %p1312_p3 = scmp.ne.s32.totalorder %s1862_s21, %s1311_s5  ;;  %s1422_s18 = smov [#allocation12]  }
 0x1ac   : > { %s1315_s0 = sshll.u32 %s1422_s18, 4  ;;  %s1316_s0 = int_to_ptr.vmem [resolvable:$false] %s1315_s0 }
 0x1ad   : > { %p1313_p7 = pnand %p1312_p3, %p1586_p5  ;;  %s1317_s22 = scalar_lea.vmem %s1316_s0, 1536 }
 0x1ae   : > { %p1318_p0 = scmp.lt.s32.totalorder %s1862_s21, %s1316_s0  ;;  %p1319_p1 = scmp.lt.s32.totalorder %s1317_s22, %s1311_s5 }
 0x1af   : > { %p1314_p10 = pneg %p1313_p7 }
 0x1b0   : > { %p1320_p13 = por %p1319_p1, %p1318_p0 }
 0x1b2   : > { %p1321_p2 = pnand %p1320_p13, %p1314_p10 }
 0x1b4   : > { %1324 = shalt.err (!%p1321_p2)
}
 0x1b5   : > { %s1325_s25 = scalar_lea.hbm %s1860_s20, 768  ;;  %s1329_s3 = scalar_lea.hbm %s1950_s7, 1536 }
 0x1b6   : > { %p1326_p12 = scmp.ne.s32.totalorder %s1860_s20, %s1325_s25  ;;  %p1330_p4 = scmp.lt.u32.totalorder %s1860_s20, %s1950_s7 }
 0x1b7   : > { %p1331_p8 = scmp.lt.u32.totalorder %s1329_s3, %s1325_s25  ;;  %p1333_p3 = scmp.lt.u32.totalorder %s1325_s25, %s1860_s20 }
 0x1b8   : > { %p1327_p6 = pnand %p1326_p12, %p1586_p5 }
 0x1b9   : > { %p1332_p9 = por %p1331_p8, %p1330_p4 }
 0x1ba   : > { %p1328_p11 = pneg %p1327_p6 }
 0x1bb   : > { %p1334_p7 = por %p1333_p3, %p1332_p9 }
 0x1bd   : > { %p1335_p10 = pnand %p1334_p7, %p1328_p11 }
 0x1bf   : > { %1338 = shalt.err (!%p1335_p10)
}
 0x1c0   : > { %1052 = dma.vmem_to_hbm [thread:$0]  (%p1586_p5), %s1862_s21, 768, %s1860_s20, %s803_s15, %s1420_s14, %s1420_s14, %s1421_s23  }
 0x1c1 PF: > { %s854_s2 = sand.u32 1, %s1389_s27   ;;  %p1982_p0 = scmp.ne.s32.totalorder %s1966_s16, 0 }
 0x1c2   : > { %p1983_p1 = scmp.ge.s32.totalorder %s1409_s10, 2  ;;  %s855_s6 = scalar_lea.sflag [#allocation4], %s854_s2 }
 0x1c4   : > { %p1074_p13 = pnand %p1983_p1, %p1982_p0 }
 0x1c6   : > { %1380 = dma.done.wait (!%p1074_p13), %s855_s6, 768  }
 0x1c7   : > { %1382 = vsyncadd (!%p1074_p13), %s855_s6, 4294966528  ;;  %s864_s24 = scalar_lea.sflag [#allocation14], %s854_s2 }
 0x1c8   : > { %1384 = dma.done.wait (!%p1074_p13), %s864_s24, 768  }
 0x1c9   : > { %1386 = vsyncadd (!%p1074_p13), %s864_s24, 4294966528  ;;  %s31_s10 = sadd.s32 1, %s1409_s10   ;;  %s1984_s27 = smov %s1393_s28 }
 0x1ca   : > { %p28_p2 = scmp.ge.s32.totalorder %s31_s10, 4   ;;  %s1985_s28 = smov %s1397_s29 }
 0x1cb   : > { %s1986_s29 = smov %s1598_s26  ;;  %s1987_s30 = smov %s1405_s9 }
 0x1cc   : > { %s1988_s9 = smov %s1990_s11  ;;  %30 = sbr.rel (!%p28_p2) target bundleno = 19 (0x13), region = 127 }
 0x1d3   :  { %869 = vsyncpa [#allocation3], 1 }
 0x1d4   :  { %871 = vsyncpa [#allocation3 + $0x1], 1 }
 0x1d5   :  { %872 = vsyncpa [#allocation4], 1 }
 0x1d6   :  { %874 = vsyncpa [#allocation4 + $0x1], 1 }
 0x1d7   :  { %875 = vsyncpa [#allocation14], 1 }
 0x1d8   :  { %877 = vsyncpa [#allocation14 + $0x1], 1 }
 0x1d9   :  { %878 = vsyncpa [#allocation5], 1 }
 0x1da   :  { %880 = vsyncpa [#allocation5 + $0x1], 1 }
 0x1db   :  { %881 = vsyncpa [#allocation8], 1 }
 0x1dc   :  { %882 = vsyncpa [#allocation11], 1 }

</bundles_post_ra>
